<compile_context>
chip_gen: v7x
topology: tpu7x:2x2x1
jax: 0.10.0
libtpu: 0.0.40
codegen_flags: <defaults>
</compile_context>

<pallas_src>
import jax
import jax.numpy as jnp
from jax.experimental import pallas as pl
from jax.experimental.pallas import tpu as pltpu

EPS = 1e-5


def _round_up(x, m):
    return (x + m - 1) // m * m


def make_cbr_kernel(N, L, Cop, K):
    """Fused CBR kernel body for fixed (N, L, padded-channel Cop, K)."""
    P = (K - 1) // 2
    M = N * L
    inv_M = 1.0 / float(M)

    def kernel(xcol_ref, w1_ref, g1_ref, be1_ref, w2_ref, g2_ref, be2_ref,
               o_ref):
        # -------- conv1: single MXU matmul on the lane-dense im2col operand --
        h1 = jnp.dot(xcol_ref[...], w1_ref[...],
                     preferred_element_type=jnp.float32)          # (M, Cop)

        # -------- BatchNorm1d (training stats, centered var) + ReLU ----------
        m1 = jnp.sum(h1, axis=0, keepdims=True) * inv_M
        c1 = h1 - m1
        v1 = jnp.sum(c1 * c1, axis=0, keepdims=True) * inv_M
        scale1 = jax.lax.rsqrt(v1 + EPS) * g1_ref[...]
        r1 = jnp.maximum(c1 * scale1 + be1_ref[...], 0.0)         # (M, Cop)

        # -------- conv2: ONE fused matmul, taps combined via XLU rolls -------
        h2 = jnp.dot(r1, w2_ref[...],
                     preferred_element_type=jnp.float32)          # (M, K*Cop)

        # Hoisted row-position index (within-sequence position l of each row).
        lidx = jax.lax.broadcasted_iota(jnp.int32, (M, Cop), 0) % L

        acc = h2[:, P * Cop:(P + 1) * Cop]                        # tap d = 0
        for k in range(K):
            d = k - P
            if d == 0:
                continue
            grp = h2[:, k * Cop:(k + 1) * Cop]                    # p_d, (M, Cop)
            # acc[m] += p_d[m + d] when l(m) + d is still inside [0, L).
            rolled = pltpu.roll(grp, (-d) % M, 0)
            valid = (lidx >= -d) if d < 0 else (lidx < (L - d))
            acc = acc + jnp.where(valid, rolled, 0.0)

        # -------- BatchNorm1d + ReLU -----------------------------------------
        m2 = jnp.sum(acc, axis=0, keepdims=True) * inv_M
        c2 = acc - m2
        v2 = jnp.sum(c2 * c2, axis=0, keepdims=True) * inv_M
        scale2 = jax.lax.rsqrt(v2 + EPS) * g2_ref[...]
        o_ref[...] = jnp.maximum(c2 * scale2 + be2_ref[...], 0.0)

    return kernel, P, M


def cbr_forward(x_ncl, params):
    """x_ncl: (N, Cin, L) float32, PyTorch NCL layout. Returns (N, Cout, L)."""
    w1, b1, g1, be1, w2, b2, g2, be2 = params
    del b1, b2  # conv biases cancel exactly under training-mode BatchNorm
    N, Ci, L = x_ncl.shape
    Co, _, K = w1.shape
    assert K % 2 == 1, "padding=(K-1)//2 matches PyTorch 'same' only for odd K"
    P = (K - 1) // 2
    M = N * L
    Cop = _round_up(Co, 128)          # lane-dense channel axis
    KCi = _round_up(K * Ci, 128)      # lane-dense contraction axis for conv1

    # ---- wrapper glue: layout conversion + im2col + channel padding ---------
    x_nlc = jnp.transpose(x_ncl, (0, 2, 1)).astype(jnp.float32)   # (N, L, Ci)
    x_pad = jnp.pad(x_nlc, ((0, 0), (P, P), (0, 0)))              # (N, L+2P, Ci)
    cols = [x_pad[:, k:k + L, :] for k in range(K)]               # K x (N, L, Ci)
    x_col = jnp.concatenate(cols, axis=-1).reshape(M, K * Ci)     # (M, K*Ci)
    x_col = jnp.pad(x_col, ((0, 0), (0, KCi - K * Ci)))           # (M, KCi)

    # conv1 weight: (Co, Ci, K) -> (K*Ci, Co) -> zero-padded (KCi, Cop).
    w1_mat = jnp.transpose(w1, (2, 1, 0)).reshape(K * Ci, Co).astype(jnp.float32)
    w1_mat = jnp.pad(w1_mat, ((0, KCi - K * Ci), (0, Cop - Co)))

    # conv2 weight: (Co, Co, K) -> per-tap (Cop, Cop) blocks fused as (Cop, K*Cop).
    w2_k = jnp.transpose(w2, (2, 1, 0)).astype(jnp.float32)       # (K, Cin, Cout)
    w2_k = jnp.pad(w2_k, ((0, 0), (0, Cop - Co), (0, Cop - Co)))  # (K, Cop, Cop)
    w2_big = jnp.transpose(w2_k, (1, 0, 2)).reshape(Cop, K * Cop)

    def pad_param(p):
        return jnp.pad(p.astype(jnp.float32), (0, Cop - Co)).reshape(1, Cop)

    g1r, be1r, g2r, be2r = (pad_param(p) for p in (g1, be1, g2, be2))

    kernel, _, _ = make_cbr_kernel(N, L, Cop, K)

    def full(shape):
        return pl.BlockSpec(shape, lambda i: (0,) * len(shape))

    out = pl.pallas_call(
        kernel,
        out_shape=jax.ShapeDtypeStruct((M, Cop), jnp.float32),
        grid=(1,),
        in_specs=[full((M, KCi)),
                  full((KCi, Cop)), full((1, Cop)), full((1, Cop)),
                  full((Cop, K * Cop)), full((1, Cop)), full((1, Cop))],
        out_specs=full((M, Cop)),
        compiler_params=pltpu.CompilerParams(
            dimension_semantics=("arbitrary",),
            vmem_limit_bytes=16 * 1024 * 1024),
    )(x_col, w1_mat, g1r, be1r, w2_big, g2r, be2r)

    # Trim the lane padding, (M, Co) -> (N, L, Co) -> (N, Co, L).
    return jnp.transpose(out[:, :Co].reshape(N, L, Co), (0, 2, 1))


def ref_forward(x, w1, b1, g1, be1, w2, b2, g2, be2):
    """Pure-JAX reference mirroring the PyTorch CBR forward (training-mode BN)."""
    K = w1.shape[-1]
    P = (K - 1) // 2

    def conv(x, w, b):
        y = jax.lax.conv_general_dilated(
            x, w, window_strides=(1,), padding=[(P, P)],
            dimension_numbers=('NCH', 'OIH', 'NCH'),
            precision=jax.lax.Precision.HIGHEST)
        return y + b[None, :, None]

    def bn(x, g, be):
        m = x.mean(axis=(0, 2), keepdims=True)
        v = ((x - m) ** 2).mean(axis=(0, 2), keepdims=True)
        return (x - m) / jnp.sqrt(v + EPS) * g[None, :, None] + be[None, :, None]

    h = jax.nn.relu(bn(conv(x, w1, b1), g1, be1))
    h = jax.nn.relu(bn(conv(h, w2, b2), g2, be2))
    return h


if __name__ == "__main__":
    key = jax.random.PRNGKey(0)
    N, Ci, Co, L, K = 2, 4, 8, 16, 3

    ks = jax.random.split(key, 7)
    x = jax.random.normal(ks[0], (N, Ci, L), jnp.float32)
    # Deterministic synthetic parameters (shapes match nn.Conv1d / nn.BatchNorm1d).
    w1 = 0.2 * jax.random.normal(ks[1], (Co, Ci, K), jnp.float32)
    b1 = 0.1 * jax.random.normal(ks[2], (Co,), jnp.float32)
    g1 = 1.0 + 0.1 * jax.random.normal(ks[3], (Co,), jnp.float32)
    be1 = 0.1 * jax.random.normal(ks[4], (Co,), jnp.float32)
    w2 = 0.2 * jax.random.normal(ks[5], (Co, Co, K), jnp.float32)
    b2 = 0.1 * jax.random.normal(ks[6], (Co,), jnp.float32)
    g2 = jnp.ones((Co,), jnp.float32)
    be2 = jnp.zeros((Co,), jnp.float32)

    params = (w1, b1, g1, be1, w2, b2, g2, be2)

    cbr = jax.jit(cbr_forward)
    y = jax.block_until_ready(cbr(x, params))
    y_ref = ref_forward(x, *params)
    assert y.shape == (N, Co, L)
    err = float(jnp.max(jnp.abs(y - y_ref)))
    # Tolerance covers possible reduced-precision MXU passes for f32 operands.
    assert jnp.allclose(y, y_ref, rtol=1e-2, atol=1e-2), f"max abs err = {err}"
    print("KERNEL_OK")
</pallas_src>

<mosaic_0001>
module attributes {stable_mosaic.version = 11 : i64} {
  func.func @kernel(%arg0: i32, %arg1: memref<32x128xf32, #tpu.memory_space<vmem>>, %arg2: memref<128x128xf32, #tpu.memory_space<vmem>>, %arg3: memref<1x128xf32, #tpu.memory_space<vmem>>, %arg4: memref<1x128xf32, #tpu.memory_space<vmem>>, %arg5: memref<128x384xf32, #tpu.memory_space<vmem>>, %arg6: memref<1x128xf32, #tpu.memory_space<vmem>>, %arg7: memref<1x128xf32, #tpu.memory_space<vmem>>, %arg8: memref<32x128xf32, #tpu.memory_space<vmem>>) attributes {dimension_semantics = [#tpu.dimension_semantics<arbitrary>], iteration_bounds = array<i64: 1>, scalar_prefetch = 0 : i64, scratch_operands = 0 : i64, tpu.core_type = #tpu.core_type<tc>, window_params = [{pipeline_mode = #tpu.pipeline_mode<synchronous>, transform_indices = @transform_0, window_bounds = array<i64: 32, 128>}, {pipeline_mode = #tpu.pipeline_mode<synchronous>, transform_indices = @transform_1, window_bounds = array<i64: 128, 128>}, {pipeline_mode = #tpu.pipeline_mode<synchronous>, transform_indices = @transform_2, window_bounds = array<i64: 1, 128>}, {pipeline_mode = #tpu.pipeline_mode<synchronous>, transform_indices = @transform_3, window_bounds = array<i64: 1, 128>}, {pipeline_mode = #tpu.pipeline_mode<synchronous>, transform_indices = @transform_4, window_bounds = array<i64: 128, 384>}, {pipeline_mode = #tpu.pipeline_mode<synchronous>, transform_indices = @transform_5, window_bounds = array<i64: 1, 128>}, {pipeline_mode = #tpu.pipeline_mode<synchronous>, transform_indices = @transform_6, window_bounds = array<i64: 1, 128>}, {pipeline_mode = #tpu.pipeline_mode<synchronous>, transform_indices = @transform_7, window_bounds = array<i64: 32, 128>}]} {
    %c0 = arith.constant 0 : index
    %c0_0 = arith.constant 0 : index
    %0 = vector.load %arg1[%c0, %c0_0] : memref<32x128xf32, #tpu.memory_space<vmem>>, vector<32x128xf32>
    %c0_1 = arith.constant 0 : index
    %c0_2 = arith.constant 0 : index
    %1 = vector.load %arg2[%c0_1, %c0_2] : memref<128x128xf32, #tpu.memory_space<vmem>>, vector<128x128xf32>
    %cst = arith.constant dense<0.000000e+00> : vector<32x128xf32>
    %2 = tpu.matmul %0, %1, %cst {dimension_numbers = #tpu.dot_dimension_numbers<[1], [0], [0], [1], [0, 0, 1, 1], [], []>} : vector<32x128xf32>, vector<128x128xf32>, vector<32x128xf32> -> vector<32x128xf32>
    %cst_3 = arith.constant dense<0.000000e+00> : vector<128xf32>
    %3 = vector.multi_reduction <add>, %2, %cst_3 [0] : vector<32x128xf32> to vector<128xf32>
    %4 = vector.shape_cast %3 : vector<128xf32> to vector<1x128xf32>
    %cst_4 = arith.constant 3.125000e-02 : f32
    %5 = vector.broadcast %cst_4 : f32 to vector<1x128xf32>
    %6 = arith.mulf %4, %5 : vector<1x128xf32>
    %7 = vector.broadcast %6 : vector<1x128xf32> to vector<32x128xf32>
    %8 = arith.subf %2, %7 : vector<32x128xf32>
    %9 = arith.mulf %8, %8 : vector<32x128xf32>
    %cst_5 = arith.constant dense<0.000000e+00> : vector<128xf32>
    %10 = vector.multi_reduction <add>, %9, %cst_5 [0] : vector<32x128xf32> to vector<128xf32>
    %11 = vector.shape_cast %10 : vector<128xf32> to vector<1x128xf32>
    %cst_6 = arith.constant 3.125000e-02 : f32
    %12 = vector.broadcast %cst_6 : f32 to vector<1x128xf32>
    %13 = arith.mulf %11, %12 : vector<1x128xf32>
    %cst_7 = arith.constant 9.99999974E-6 : f32
    %14 = vector.broadcast %cst_7 : f32 to vector<1x128xf32>
    %15 = arith.addf %13, %14 : vector<1x128xf32>
    %16 = math.rsqrt %15 : vector<1x128xf32>
    %c0_8 = arith.constant 0 : index
    %c0_9 = arith.constant 0 : index
    %17 = vector.load %arg3[%c0_8, %c0_9] : memref<1x128xf32, #tpu.memory_space<vmem>>, vector<1x128xf32>
    %18 = arith.mulf %16, %17 : vector<1x128xf32>
    %19 = vector.broadcast %18 : vector<1x128xf32> to vector<32x128xf32>
    %20 = arith.mulf %8, %19 : vector<32x128xf32>
    %c0_10 = arith.constant 0 : index
    %c0_11 = arith.constant 0 : index
    %21 = vector.load %arg4[%c0_10, %c0_11] : memref<1x128xf32, #tpu.memory_space<vmem>>, vector<1x128xf32>
    %22 = vector.broadcast %21 : vector<1x128xf32> to vector<32x128xf32>
    %23 = arith.addf %20, %22 : vector<32x128xf32>
    %cst_12 = arith.constant 0.000000e+00 : f32
    %24 = vector.broadcast %cst_12 : f32 to vector<32x128xf32>
    %25 = arith.maximumf %23, %24 : vector<32x128xf32>
    %c0_13 = arith.constant 0 : index
    %c0_14 = arith.constant 0 : index
    %26 = vector.load %arg5[%c0_13, %c0_14] : memref<128x384xf32, #tpu.memory_space<vmem>>, vector<128x384xf32>
    %cst_15 = arith.constant dense<0.000000e+00> : vector<32x384xf32>
    %27 = tpu.matmul %25, %26, %cst_15 {dimension_numbers = #tpu.dot_dimension_numbers<[1], [0], [0], [1], [0, 0, 1, 1], [], []>} : vector<32x128xf32>, vector<128x384xf32>, vector<32x384xf32> -> vector<32x384xf32>
    %28 = tpu.iota {dimensions = array<i32: 0>} : vector<32x128xi32>
    %c16_i32 = arith.constant 16 : i32
    %c0_i32 = arith.constant 0 : i32
    %29 = arith.cmpi eq, %c16_i32, %c0_i32 : i32
    %c1_i32 = arith.constant 1 : i32
    %30 = arith.select %29, %c1_i32, %c16_i32 : i32
    %31 = vector.broadcast %30 : i32 to vector<32x128xi32>
    %32 = arith.remsi %28, %31 : vector<32x128xi32>
    %c0_i32_16 = arith.constant 0 : i32
    %33 = vector.broadcast %c0_i32_16 : i32 to vector<32x128xi32>
    %34 = arith.cmpi ne, %32, %33 : vector<32x128xi32>
    %c0_i32_17 = arith.constant 0 : i32
    %35 = vector.broadcast %c0_i32_17 : i32 to vector<32x128xi32>
    %36 = arith.cmpi slt, %32, %35 : vector<32x128xi32>
    %c0_i32_18 = arith.constant 0 : i32
    %37 = arith.cmpi slt, %30, %c0_i32_18 : i32
    %38 = vector.broadcast %37 : i1 to vector<32x128xi1>
    %39 = vector.broadcast %38 : vector<32x128xi1> to vector<32x128xi1>
    %40 = arith.xori %36, %39 : vector<32x128xi1>
    %41 = arith.andi %40, %34 : vector<32x128xi1>
    %42 = vector.broadcast %30 : i32 to vector<32x128xi32>
    %43 = arith.addi %32, %42 : vector<32x128xi32>
    %44 = arith.select %41, %43, %32 : vector<32x128xi1>, vector<32x128xi32>
    %45 = vector.extract_strided_slice %27 {offsets = [0, 128], sizes = [32, 128], strides = [1, 1]} : vector<32x384xf32> to vector<32x128xf32>
    %46 = vector.extract_strided_slice %27 {offsets = [0, 0], sizes = [32, 128], strides = [1, 1]} : vector<32x384xf32> to vector<32x128xf32>
    %c1_i32_19 = arith.constant 1 : i32
    %47 = tpu.dynamic_rotate %46 by %c1_i32_19 dim 0 : vector<32x128xf32>, i32 -> vector<32x128xf32>
    %c1_i32_20 = arith.constant 1 : i32
    %48 = vector.broadcast %c1_i32_20 : i32 to vector<32x128xi32>
    %49 = arith.cmpi sge, %44, %48 : vector<32x128xi32>
    %cst_21 = arith.constant 0.000000e+00 : f32
    %50 = vector.broadcast %cst_21 : f32 to vector<32x128xf32>
    %51 = arith.select %49, %47, %50 : vector<32x128xi1>, vector<32x128xf32>
    %52 = arith.addf %45, %51 : vector<32x128xf32>
    %53 = vector.extract_strided_slice %27 {offsets = [0, 256], sizes = [32, 128], strides = [1, 1]} : vector<32x384xf32> to vector<32x128xf32>
    %c31_i32 = arith.constant 31 : i32
    %54 = tpu.dynamic_rotate %53 by %c31_i32 dim 0 : vector<32x128xf32>, i32 -> vector<32x128xf32>
    %c15_i32 = arith.constant 15 : i32
    %55 = vector.broadcast %c15_i32 : i32 to vector<32x128xi32>
    %56 = arith.cmpi slt, %44, %55 : vector<32x128xi32>
    %cst_22 = arith.constant 0.000000e+00 : f32
    %57 = vector.broadcast %cst_22 : f32 to vector<32x128xf32>
    %58 = arith.select %56, %54, %57 : vector<32x128xi1>, vector<32x128xf32>
    %59 = arith.addf %52, %58 : vector<32x128xf32>
    %cst_23 = arith.constant dense<0.000000e+00> : vector<128xf32>
    %60 = vector.multi_reduction <add>, %59, %cst_23 [0] : vector<32x128xf32> to vector<128xf32>
    %61 = vector.shape_cast %60 : vector<128xf32> to vector<1x128xf32>
    %cst_24 = arith.constant 3.125000e-02 : f32
    %62 = vector.broadcast %cst_24 : f32 to vector<1x128xf32>
    %63 = arith.mulf %61, %62 : vector<1x128xf32>
    %64 = vector.broadcast %63 : vector<1x128xf32> to vector<32x128xf32>
    %65 = arith.subf %59, %64 : vector<32x128xf32>
    %66 = arith.mulf %65, %65 : vector<32x128xf32>
    %cst_25 = arith.constant dense<0.000000e+00> : vector<128xf32>
    %67 = vector.multi_reduction <add>, %66, %cst_25 [0] : vector<32x128xf32> to vector<128xf32>
    %68 = vector.shape_cast %67 : vector<128xf32> to vector<1x128xf32>
    %cst_26 = arith.constant 3.125000e-02 : f32
    %69 = vector.broadcast %cst_26 : f32 to vector<1x128xf32>
    %70 = arith.mulf %68, %69 : vector<1x128xf32>
    %cst_27 = arith.constant 9.99999974E-6 : f32
    %71 = vector.broadcast %cst_27 : f32 to vector<1x128xf32>
    %72 = arith.addf %70, %71 : vector<1x128xf32>
    %73 = math.rsqrt %72 : vector<1x128xf32>
    %c0_28 = arith.constant 0 : index
    %c0_29 = arith.constant 0 : index
    %74 = vector.load %arg6[%c0_28, %c0_29] : memref<1x128xf32, #tpu.memory_space<vmem>>, vector<1x128xf32>
    %75 = arith.mulf %73, %74 : vector<1x128xf32>
    %76 = vector.broadcast %75 : vector<1x128xf32> to vector<32x128xf32>
    %77 = arith.mulf %65, %76 : vector<32x128xf32>
    %c0_30 = arith.constant 0 : index
    %c0_31 = arith.constant 0 : index
    %78 = vector.load %arg7[%c0_30, %c0_31] : memref<1x128xf32, #tpu.memory_space<vmem>>, vector<1x128xf32>
    %79 = vector.broadcast %78 : vector<1x128xf32> to vector<32x128xf32>
    %80 = arith.addf %77, %79 : vector<32x128xf32>
    %cst_32 = arith.constant 0.000000e+00 : f32
    %81 = vector.broadcast %cst_32 : f32 to vector<32x128xf32>
    %82 = arith.maximumf %80, %81 : vector<32x128xf32>
    %c0_33 = arith.constant 0 : index
    %c0_34 = arith.constant 0 : index
    %83 = vector.load %arg8[%c0_33, %c0_34] : memref<32x128xf32, #tpu.memory_space<vmem>>, vector<32x128xf32>
    tpu.vector_store %arg8[%c0_33, %c0_34], %82 {strides = array<i32>} : memref<32x128xf32, #tpu.memory_space<vmem>>, vector<32x128xf32>,
    return
  }
  func.func @transform_0(%arg0: i32) -> (i32, i32) {
    %c0_i32 = arith.constant 0 : i32
    %c0_i32_0 = arith.constant 0 : i32
    %c0_i32_1 = arith.constant 0 : i32
    return %c0_i32, %c0_i32_0 : i32, i32
  }
  func.func @transform_1(%arg0: i32) -> (i32, i32) {
    %c0_i32 = arith.constant 0 : i32
    %c0_i32_0 = arith.constant 0 : i32
    %c0_i32_1 = arith.constant 0 : i32
    return %c0_i32, %c0_i32_0 : i32, i32
  }
  func.func @transform_2(%arg0: i32) -> (i32, i32) {
    %c0_i32 = arith.constant 0 : i32
    %c0_i32_0 = arith.constant 0 : i32
    %c0_i32_1 = arith.constant 0 : i32
    return %c0_i32, %c0_i32_0 : i32, i32
  }
  func.func @transform_3(%arg0: i32) -> (i32, i32) {
    %c0_i32 = arith.constant 0 : i32
    %c0_i32_0 = arith.constant 0 : i32
    %c0_i32_1 = arith.constant 0 : i32
    return %c0_i32, %c0_i32_0 : i32, i32
  }
  func.func @transform_4(%arg0: i32) -> (i32, i32) {
    %c0_i32 = arith.constant 0 : i32
    %c0_i32_0 = arith.constant 0 : i32
    %c0_i32_1 = arith.constant 0 : i32
    return %c0_i32, %c0_i32_0 : i32, i32
  }
  func.func @transform_5(%arg0: i32) -> (i32, i32) {
    %c0_i32 = arith.constant 0 : i32
    %c0_i32_0 = arith.constant 0 : i32
    %c0_i32_1 = arith.constant 0 : i32
    return %c0_i32, %c0_i32_0 : i32, i32
  }
  func.func @transform_6(%arg0: i32) -> (i32, i32) {
    %c0_i32 = arith.constant 0 : i32
    %c0_i32_0 = arith.constant 0 : i32
    %c0_i32_1 = arith.constant 0 : i32
    return %c0_i32, %c0_i32_0 : i32, i32
  }
  func.func @transform_7(%arg0: i32) -> (i32, i32) {
    %c0_i32 = arith.constant 0 : i32
    %c0_i32_0 = arith.constant 0 : i32
    %c0_i32_1 = arith.constant 0 : i32
    return %c0_i32, %c0_i32_0 : i32, i32
  }
}

</mosaic_0001>

<bundles_post_ra>
// kernel: cbr_forward.1
= control target key start
LH: loop header
LB: loop body
LE: loop exit
PB: predicated region body
PF: predicated region fallthrough
CT: control target
= control target key end

     0   :  { %s1151_s1 = inlined_call_operand.vmem [shape: f32[128,128], index: 1, kind: input, shape index: {}]   ;;  %s1152_s0 = inlined_call_operand.vmem [shape: f32[32,128], index: 0, kind: input, shape index: {}]   ;;  %s1153_s4 = inlined_call_operand.vmem [shape: f32[128,384], index: 4, kind: input, shape index: {}]   ;;  %s1154_s2 = inlined_call_operand.vmem [shape: f32[1,128], index: 2, kind: input, shape index: {}]   ;;  %s1155_s3 = inlined_call_operand.vmem [shape: f32[1,128], index: 3, kind: input, shape index: {}]   ;;  %s1156_s5 = inlined_call_operand.vmem [shape: f32[1,128], index: 5, kind: input, shape index: {}]   ;;  %s1157_s6 = inlined_call_operand.vmem [shape: f32[1,128], index: 6, kind: input, shape index: {}]   ;;  %s1158_s7 = inlined_call_operand.vmem [shape: f32[32,128], index: 7, kind: output, shape index: {}]  }
   0x1   :  { %v30_v0 = vld [vmem:[%s1151_s1] sm:$0xff]  ;;  %v31_v1 = vld [vmem:[%s1151_s1 + $0x8] sm:$0xff]  ;;  %v32_v2 = vld [vmem:[%s1151_s1 + $0x10] sm:$0xff] }
   0x2   :  { %v684_v3 = vpack.c.bf16 %v31_v1, %v30_v0  ;;  %v33_v4 = vld [vmem:[%s1151_s1 + $0x18] sm:$0xff]  ;;  %v34_v6 = vld [vmem:[%s1151_s1 + $0x20] sm:$0xff]  ;;  %v35_v7 = vld [vmem:[%s1151_s1 + $0x28] sm:$0xff] }
   0x3   :  { %v688_v5 = vpack.c.bf16 %v33_v4, %v32_v2  ;;  %v692_v8 = vpack.c.bf16 %v35_v7, %v34_v6  ;;  %v26_v9 = vld [vmem:[%s1152_s0] sm:$0xff]  ;;  %v36_v10 = vld [vmem:[%s1151_s1 + $0x30] sm:$0xff]  ;;  %v37_v11 = vld [vmem:[%s1151_s1 + $0x38] sm:$0xff] }
   0x4   :  { %685 = vmatprep.subr.bf16.mxu0 %v684_v3  ;;  %640 = vmatprep.mubr.f32.mxu0 %v26_v9  ;;  %v696_v12 = vpack.c.bf16 %v37_v11, %v36_v10  ;;  %v38_v13 = vld [vmem:[%s1151_s1 + $0x40] sm:$0xff]  ;;  %v39_v14 = vld [vmem:[%s1151_s1 + $0x48] sm:$0xff]  ;;  %v40_v16 = vld [vmem:[%s1151_s1 + $0x50] sm:$0xff] }
   0x5   :  { %687 = vmatpush3.bf16.msra.mxu0 %v684_v3  ;;  %v700_v15 = vpack.c.bf16 %v39_v14, %v38_v13  ;;  %v41_v17 = vld [vmem:[%s1151_s1 + $0x58] sm:$0xff]  ;;  %v42_v19 = vld [vmem:[%s1151_s1 + $0x60] sm:$0xff]  ;;  %v43_v20 = vld [vmem:[%s1151_s1 + $0x68] sm:$0xff] }
   0x6   :  { %689 = vmatprep.subr.bf16.mxu0 %v688_v5  ;;  %v704_v18 = vpack.c.bf16 %v41_v17, %v40_v16  ;;  %v708_v21 = vpack.c.bf16 %v43_v20, %v42_v19  ;;  %v44_v22 = vld [vmem:[%s1151_s1 + $0x70] sm:$0xff]  ;;  %v45_v23 = vld [vmem:[%s1151_s1 + $0x78] sm:$0xff]  ;;  %v27_v25 = vld [vmem:[%s1152_s0 + $0x8] sm:$0xff] }
   0x7   :  { %v712_v24 = vpack.c.bf16 %v45_v23, %v44_v22  ;;  %v28_v26 = vld [vmem:[%s1152_s0 + $0x10] sm:$0xff]  ;;  %v29_v27 = vld [vmem:[%s1152_s0 + $0x18] sm:$0xff]  ;;  %v187_v28 = vld [vmem:[%s1153_s4 + $0x8] sm:$0xff] }
   0x8   :  { %v190_v29 = vld [vmem:[%s1153_s4 + $0x20] sm:$0xff]  ;;  %v189_v32 = vld [vmem:[%s1153_s4 + $0x18] sm:$0xff]  ;;  %v188_v34 = vld [vmem:[%s1153_s4 + $0x10] sm:$0xff] }
   0x9   :  { %691 = vmatpush3.bf16.msra.mxu0 %v688_v5  ;;  %v716_v30 = vpack.c.bf16 %v190_v29, %v187_v28  ;;  %v186_v31 = vld [vmem:[%s1153_s4] sm:$0xff]  ;;  %v191_v35 = vld [vmem:[%s1153_s4 + $0x28] sm:$0xff]  ;;  %v193_v37 = vld [vmem:[%s1153_s4 + $0x38] sm:$0xff] }
   0xa   :  { %693 = vmatprep.subr.bf16.mxu0 %v692_v8  ;;  %v718_v33 = vpack.c.bf16 %v189_v32, %v186_v31  ;;  %v920_v36 = vpack.c.bf16 %v191_v35, %v188_v34  ;;  %v196_v38 = vld [vmem:[%s1153_s4 + $0x50] sm:$0xff]  ;;  %v195_v41 = vld [vmem:[%s1153_s4 + $0x48] sm:$0xff]  ;;  %v194_v43 = vld [vmem:[%s1153_s4 + $0x40] sm:$0xff] }
   0xb   :  { %717 = vmatprep.subr.bf16.mxu1 %v716_v30  ;;  %v720_v39 = vpack.c.bf16 %v196_v38, %v193_v37  ;;  %v192_v40 = vld [vmem:[%s1153_s4 + $0x30] sm:$0xff]  ;;  %v197_v44 = vld [vmem:[%s1153_s4 + $0x58] sm:$0xff]  ;;  %v199_v46 = vld [vmem:[%s1153_s4 + $0x68] sm:$0xff]  ;;  %v801_v37 = vmov 0.0  }
   0xc   :  { %719 = vmatpush1.bf16.msra.mxu1 %v718_v33  ;;  %v722_v42 = vpack.c.bf16 %v195_v41, %v192_v40  ;;  %v942_v45 = vpack.c.bf16 %v197_v44, %v194_v43  ;;  %v202_v47 = vld [vmem:[%s1153_s4 + $0x80] sm:$0xff]  ;;  %v201_v50 = vld [vmem:[%s1153_s4 + $0x78] sm:$0xff]  ;;  %v200_v52 = vld [vmem:[%s1153_s4 + $0x70] sm:$0xff]  ;;  %298 = vmatprep.mubr.f32.mxu1 %v801_v37 }
   0xd   :  { %695 = vmatpush3.bf16.msra.mxu0 %v692_v8  ;;  %721 = vmatprep.subr.bf16.mxu1 %v720_v39  ;;  %v724_v48 = vpack.c.bf16 %v202_v47, %v199_v46  ;;  %v198_v49 = vld [vmem:[%s1153_s4 + $0x60] sm:$0xff]  ;;  %v203_v53 = vld [vmem:[%s1153_s4 + $0x88] sm:$0xff]  ;;  %v205_v55 = vld [vmem:[%s1153_s4 + $0x98] sm:$0xff] }
   0xe   :  { %697 = vmatprep.subr.bf16.mxu0 %v696_v12  ;;  %v726_v51 = vpack.c.bf16 %v201_v50, %v198_v49  ;;  %v964_v54 = vpack.c.bf16 %v203_v53, %v200_v52  ;;  %v208_v56 = vld [vmem:[%s1153_s4 + $0xb0] sm:$0xff]  ;;  %v207_v59 = vld [vmem:[%s1153_s4 + $0xa8] sm:$0xff]  ;;  %v206_v61 = vld [vmem:[%s1153_s4 + $0xa0] sm:$0xff] }
   0xf   :  { %v728_v57 = vpack.c.bf16 %v208_v56, %v205_v55  ;;  %v204_v58 = vld [vmem:[%s1153_s4 + $0x90] sm:$0xff]  ;;  %v209_v62 = vld [vmem:[%s1153_s4 + $0xb8] sm:$0xff]  ;;  %v211_v0 = vld [vmem:[%s1153_s4 + $0xc8] sm:$0xff] }
  0x10   :  { %723 = vmatpush1.bf16.msra.mxu1 %v722_v42  ;;  %v730_v60 = vpack.c.bf16 %v207_v59, %v204_v58  ;;  %v986_v63 = vpack.c.bf16 %v209_v62, %v206_v61  ;;  %v214_v1 = vld [vmem:[%s1153_s4 + $0xe0] sm:$0xff]  ;;  %v213_v4 = vld [vmem:[%s1153_s4 + $0xd8] sm:$0xff]  ;;  %v212_v6 = vld [vmem:[%s1153_s4 + $0xd0] sm:$0xff] }
  0x11   :  { %699 = vmatpush3.bf16.msra.mxu0 %v696_v12  ;;  %725 = vmatprep.subr.bf16.mxu1 %v724_v48  ;;  %v732_v2 = vpack.c.bf16 %v214_v1, %v211_v0  ;;  %v210_v3 = vld [vmem:[%s1153_s4 + $0xc0] sm:$0xff]  ;;  %v215_v7 = vld [vmem:[%s1153_s4 + $0xe8] sm:$0xff]  ;;  %v217_v9 = vld [vmem:[%s1153_s4 + $0xf8] sm:$0xff] }
  0x12   :  { %701 = vmatprep.subr.bf16.mxu0 %v700_v15  ;;  %v734_v5 = vpack.c.bf16 %v213_v4, %v210_v3  ;;  %v1008_v8 = vpack.c.bf16 %v215_v7, %v212_v6  ;;  %v220_v10 = vld [vmem:[%s1153_s4 + $0x110] sm:$0xff]  ;;  %v219_v13 = vld [vmem:[%s1153_s4 + $0x108] sm:$0xff]  ;;  %v221_v16 = vld [vmem:[%s1153_s4 + $0x118] sm:$0xff] }
  0x13   :  { %v736_v11 = vpack.c.bf16 %v220_v10, %v217_v9  ;;  %v216_v12 = vld [vmem:[%s1153_s4 + $0xf0] sm:$0xff]  ;;  %v226_v19 = vld [vmem:[%s1153_s4 + $0x140] sm:$0xff]  ;;  %v225_v22 = vld [vmem:[%s1153_s4 + $0x138] sm:$0xff] }
  0x14   :  { %727 = vmatpush1.bf16.msra.mxu1 %v726_v51  ;;  %v738_v14 = vpack.c.bf16 %v219_v13, %v216_v12  ;;  %v232_v28 = vld [vmem:[%s1153_s4 + $0x170] sm:$0xff]  ;;  %v231_v31 = vld [vmem:[%s1153_s4 + $0x168] sm:$0xff]  ;;  %v230_v33 = vld [vmem:[%s1153_s4 + $0x160] sm:$0xff] }
  0x15   :  { %703 = vmatpush3.bf16.msra.mxu0 %v700_v15  ;;  %729 = vmatprep.subr.bf16.mxu1 %v728_v57  ;;  %v218_v15 = vld [vmem:[%s1153_s4 + $0x100] sm:$0xff]  ;;  %v228_v30 = vld [vmem:[%s1153_s4 + $0x150] sm:$0xff]  ;;  %v233_v34 = vld [vmem:[%s1153_s4 + $0x178] sm:$0xff] }
  0x16   :  { %705 = vmatprep.subr.bf16.mxu0 %v704_v18  ;;  %v1030_v17 = vpack.c.bf16 %v221_v16, %v218_v15  ;;  %v746_v32 = vpack.c.bf16 %v231_v31, %v228_v30  ;;  %v1074_v35 = vpack.c.bf16 %v233_v34, %v230_v33  ;;  %v161_v13 = vld [vmem:[%s1154_s2] sm:$0x1] }
  0x18   :  { %731 = vmatpush1.bf16.msra.mxu1 %v730_v60 }
  0x19   :  { %707 = vmatpush3.bf16.msra.mxu0 %v704_v18  ;;  %733 = vmatprep.subr.bf16.mxu1 %v732_v2  ;;  %v223_v18 = vld [vmem:[%s1153_s4 + $0x128] sm:$0xff] }
  0x1a   :  { %709 = vmatprep.subr.bf16.mxu0 %v708_v21  ;;  %v740_v20 = vpack.c.bf16 %v226_v19, %v223_v18  ;;  %v566_v19 = vld [vmem:[%s1155_s3] ss:$0 sm:$0xff] }
  0x1c   :  { %735 = vmatpush1.bf16.msra.mxu1 %v734_v5 }
  0x1d   :  { %711 = vmatpush3.bf16.msra.mxu0 %v708_v21  ;;  %737 = vmatprep.subr.bf16.mxu1 %v736_v11  ;;  %v222_v21 = vld [vmem:[%s1153_s4 + $0x120] sm:$0xff]  ;;  %v163_v11 = vlaneseq }
  0x1e   :  { %713 = vmatprep.subr.bf16.mxu0 %v712_v24  ;;  %v742_v23 = vpack.c.bf16 %v225_v22, %v222_v21 }
  0x1f   :  { %v1080_v12 = vshrl.u32 %v163_v11, 7 }
  0x20   :  { %739 = vmatpush1.bf16.msra.mxu1 %v738_v14 }
  0x21   :  { %715 = vmatpush3.bf16.msra.mxu0 %v712_v24  ;;  %v224_v24 = vld [vmem:[%s1153_s4 + $0x130] sm:$0xff]  ;;  %741 = vmatprep.subr.bf16.mxu1 %v740_v20  ;;  %v165_v14 = vsub.s32 0, %v1080_v12  ;;  %vm486_vm0 = vcmp.lt.s32.totalorder %v1080_v12, 7  ;;  %vm465_vm1 = vcmp.lt.s32.totalorder %v1080_v12, 1 }
  0x22   :  { %749 = vmatprep.subr.bf16.mxu0 %v920_v36 }
  0x24   :  { %641 = vmatmul.mubr.f32.vlgmr.msra.gmra.mrb[0].mxu0 %v27_v25  ;;  %v227_v25 = vld [vmem:[%s1153_s4 + $0x148] sm:$0xff]  ;;  %743 = vmatpush1.bf16.msra.mxu1 %v742_v23 }
  0x25   :  { %643 = vmatprep.mubr.f32.mxu0 %v28_v26  ;;  %751 = vmatpush3.bf16.msra.mxu0 %v920_v36  ;;  %v1052_v26 = vpack.c.bf16 %v227_v25, %v224_v24 }
  0x26   :  { %753 = vmatprep.subr.bf16.mxu0 %v942_v45 }
  0x28   :  { %644 = vmatmul.mubr.f32.gmra.mrb[2].mxu0 %v29_v27  ;;  %v229_v27 = vld [vmem:[%s1153_s4 + $0x158] sm:$0xff] }
  0x29   :  { %755 = vmatpush3.bf16.msra.mxu0 %v942_v45  ;;  %v744_v29 = vpack.c.bf16 %v232_v28, %v229_v27 }
  0x2a   :  { %757 = vmatprep.subr.bf16.mxu0 %v964_v54 }
  0x2b   :  { %745 = vmatprep.subr.bf16.mxu1 %v744_v29 }
  0x2c   :  { %747 = vmatpush1.bf16.msra.mxu1 %v746_v32  ;;  %v411_v32 = vadd.s32 16, %v1080_v12 }
  0x2d   :  { %759 = vmatpush3.bf16.msra.mxu0 %v964_v54  ;;  %780 = vmatprep.subr.bf16.mxu1 %v920_v36 }
  0x2e   :  { %761 = vmatprep.subr.bf16.mxu0 %v986_v63 }
  0x31   :  { %763 = vmatpush3.bf16.msra.mxu0 %v986_v63 }
  0x32   :  { %765 = vmatprep.subr.bf16.mxu0 %v1008_v8 }
  0x35   :  { %767 = vmatpush3.bf16.msra.mxu0 %v1008_v8 }
  0x36   :  { %769 = vmatprep.subr.bf16.mxu0 %v1030_v17 }
  0x39   :  { %771 = vmatpush3.bf16.msra.mxu0 %v1030_v17 }
  0x3a   :  { %773 = vmatprep.subr.bf16.mxu0 %v1052_v26 }
  0x3d   :  { %775 = vmatpush3.bf16.msra.mxu0 %v1052_v26 }
  0x3e   :  { %777 = vmatprep.subr.bf16.mxu0 %v1074_v35 }
  0x41   :  { %779 = vmatpush3.bf16.msra.mxu0 %v1074_v35 }
  0xf7   :  { %v642_v38 = vpop.f32.mrb[0].mxu0 }
  0xf8   :  { %v112_v39 = vpop.f32.mrb[1].mxu0 }
  0xf9   :  { %v131_v40 = vadd.f32 %v642_v38, %v112_v39 }
  0xfb   :  { %v645_v41 = vpop.f32.mrb[2].mxu0 }
  0xfc   :  { %v122_v42 = vpop.f32.mrb[3].mxu0 }
  0xfd   :  { %v132_v43 = vadd.f32 %v131_v40, %v122_v42 }
  0xff   :  { %v133_v44 = vadd.f32 %v645_v41, %v132_v43 }
 0x101   :  { %v134_v46 = vrot.slane %v133_v44, 4 }
 0x103   :  { %v135_v47 = vadd.f32 %v134_v46, %v133_v44  ;;  %v417_v46 = vand.u32 15, %v1080_v12 }
 0x105   :  { %v136_v48 = vrot.slane %v135_v47, 2  ;;  %vm470_vm3 = vcmp.ge.s32.totalorder %v417_v46, 1  ;;  %v567_v46 = vld [vmem:[%s1157_s6] ss:$0 sm:$0xff] }
 0x107   :  { %v137_v49 = vadd.f32 %v136_v48, %v135_v47 }
 0x109   :  { %v138_v50 = vrot.slane %v137_v49, 1 }
 0x10b   :  { %v139_v51 = vadd.f32 %v138_v50, %v137_v49 }
 0x10d   :  { %v140_v52 = vmul.f32 0.03125, %v139_v51 }
 0x10f   :  { %v141_v53 = vsub.f32 %v112_v39, %v140_v52  ;;  %v142_v55 = vsub.f32 %v642_v38, %v140_v52  ;;  %v143_v56 = vsub.f32 %v122_v42, %v140_v52  ;;  %v144_v57 = vsub.f32 %v645_v41, %v140_v52 }
 0x110   :  { %v431_v39 = vand.u32 15, %v411_v32 }
 0x111   :  { %v145_v58 = vmul.f32 %v141_v53, %v141_v53  ;;  %v146_v59 = vmul.f32 %v142_v55, %v142_v55  ;;  %v147_v60 = vmul.f32 %v143_v56, %v143_v56  ;;  %v148_v62 = vmul.f32 %v144_v57, %v144_v57 }
 0x112   :  { %vm472_vm2 = vcmp.ge.s32.totalorder %v431_v39, 1 }
 0x113   :  { %v149_v61 = vadd.f32 %v146_v59, %v145_v58 }
 0x115   :  { %v150_v0 = vadd.f32 %v149_v61, %v147_v60  ;;  %v412_v60 = vadd.s32 24, %v1080_v12  ;;  %v410_v61 = vadd.s32 8, %v1080_v12 }
 0x117   :  { %v151_v1 = vadd.f32 %v150_v0, %v148_v62  ;;  %v438_v62 = vand.u32 15, %v412_v60  ;;  %v424_v0 = vand.u32 15, %v410_v61 }
 0x119   :  { %v152_v2 = vrot.slane %v151_v1, 4  ;;  %vm494_vm4 = vcmp.lt.s32.totalorder %v438_v62, 15  ;;  %vm492_vm5 = vcmp.lt.s32.totalorder %v424_v0, 15 }
 0x11b   :  { %v153_v3 = vadd.f32 %v152_v2, %v151_v1 }
 0x11d   :  { %v154_v4 = vrot.slane %v153_v3, 2 }
 0x11f   :  { %v155_v5 = vadd.f32 %v154_v4, %v153_v3 }
 0x121   :  { %v156_v6 = vrot.slane %v155_v5, 1 }
 0x123   :  { %v157_v7 = vadd.f32 %v156_v6, %v155_v5 }
 0x125   :  { %v158_v9 = vmul.f32 0.03125, %v157_v7 }
 0x127   :  { %v159_v10 = vadd.f32 1e-05, %v158_v9 }
 0x129   :  { %797 = vrsqrt.f32 %v159_v10 }
 0x133   :  { %v798_v15 = vpop.eup %797 }
 0x134   :  { %v162_v16 = vmul.f32 %v798_v15, %v161_v13 }
 0x136   :  { %v166_v18 = vrot.slane %v162_v16, %v165_v14 }
 0x138   :  { %v168_v20 = vmul.f32 %v166_v18, %v142_v55  ;;  %v169_v21 = vmul.f32 %v166_v18, %v143_v56  ;;  %v167_v22 = vmul.f32 %v166_v18, %v141_v53  ;;  %v170_v23 = vmul.f32 %v166_v18, %v144_v57 }
 0x13a   :  { %v178_v24 = vadd.f32 %v566_v19, %v167_v22  ;;  %v179_v25 = vadd.f32 %v566_v19, %v168_v20  ;;  %v180_v29 = vadd.f32 %v566_v19, %v169_v21  ;;  %v181_v31 = vadd.f32 %v566_v19, %v170_v23 }
 0x13c   :  { %v182_v27 = vmax.f32 %v178_v24, 0.0  ;;  %v183_v28 = vmax.f32 %v179_v25, 0.0  ;;  %v184_v30 = vmax.f32 %v180_v29, 0.0 }
 0x13e   :  { %299 = vmatmul.mubr.f32.vlgmr.msra.gmra.mrb[0].mxu1 %v182_v27  ;;  %678 = vmatprep.mubr.f32.mxu0 %v182_v27 }
 0x13f   :  { %788 = vmatpush3.bf16.msra.mxu1 %v920_v36  ;;  %679 = vmatmul.mubr.f32.vlgmr.msra.gmra.mrb[4].mxu0 %v183_v28  ;;  %v185_v36 = vmax.f32 %v181_v31, 0.0 }
 0x140   :  { %304 = vmatprep.mubr.f32.mxu1 %v801_v37  ;;  %781 = vmatprep.subr.bf16.mxu1 %v942_v45 }
 0x142   :  { %305 = vmatmul.mubr.f32.gmra.mrb[2].mxu1 %v183_v28 }
 0x143   :  { %789 = vmatpush3.bf16.msra.mxu1 %v942_v45  ;;  %310 = vmatprep.mubr.f32.mxu1 %v801_v37 }
 0x144   :  { %782 = vmatprep.subr.bf16.mxu1 %v964_v54 }
 0x146   :  { %311 = vmatmul.mubr.f32.gmra.mrb[4].mxu1 %v184_v30 }
 0x147   :  { %790 = vmatpush3.bf16.msra.mxu1 %v964_v54  ;;  %316 = vmatprep.mubr.f32.mxu1 %v801_v37 }
 0x148   :  { %783 = vmatprep.subr.bf16.mxu1 %v986_v63 }
 0x14a   :  { %317 = vmatmul.mubr.f32.gmra.mrb[6].mxu1 %v185_v36 }
 0x14b   :  { %791 = vmatpush3.bf16.msra.mxu1 %v986_v63  ;;  %681 = vmatprep.mubr.f32.mxu1 %v184_v30 }
 0x14c   :  { %784 = vmatprep.subr.bf16.mxu1 %v1008_v8 }
 0x14f   :  { %792 = vmatpush3.bf16.msra.mxu1 %v1008_v8 }
 0x150   :  { %785 = vmatprep.subr.bf16.mxu1 %v1030_v17 }
 0x153   :  { %793 = vmatpush3.bf16.msra.mxu1 %v1030_v17 }
 0x154   :  { %786 = vmatprep.subr.bf16.mxu1 %v1052_v26 }
 0x157   :  { %794 = vmatpush3.bf16.msra.mxu1 %v1052_v26 }
 0x158   :  { %787 = vmatprep.subr.bf16.mxu1 %v1074_v35 }
 0x15b   :  { %795 = vmatpush3.bf16.msra.mxu1 %v1074_v35 }
 0x15e   :  { %682 = vmatmul.mubr.f32.vlgmr.msra.gmra.mrb[8].mxu1 %v185_v36 }
 0x211   :  { %v300_v45 = vpop.f32.mrb[0].mxu1 }
 0x212   :  { %v302_v54 = vpop.f32.mrb[1].mxu1  ;;  %v680_v63 = vpop.f32.mrb[4].mxu0  ;;  %v461_v37 = vrot.slane %v300_v45, 7 }
 0x213   :  { %v483_v33 = vrot.slane %v680_v63, 1  ;;  %v389_v8 = vpop.f32.mrb[5].mxu0 }
 0x214   :  { %v482_v34 = vrot.slane %v389_v8, 1 }
 0x215   :  { %v306_v17 = vpop.f32.mrb[2].mxu1 }
 0x216   :  { %v489_v26 = vsel %vm486_vm0, %v482_v34, %v483_v33  ;;  %v462_v38 = vrot.slane %v306_v17, 7  ;;  %v308_v35 = vpop.f32.mrb[3].mxu1 }
 0x218   :  { %v468_v40 = vsel %vm465_vm1, %v461_v37, %v462_v38 }
 0x219   :  { %v479_v41 = vadd.f32 %v468_v40, %v308_v35  ;;  %v312_v42 = vpop.f32.mrb[4].mxu1 }
 0x21a   :  { %v463_v43 = vrot.slane %v312_v42, 7  ;;  %v314_v44 = vpop.f32.mrb[5].mxu1 }
 0x21c   :  { %v467_v47 = vsel %vm465_vm1, %v462_v38, %v463_v43 }
 0x21d   :  { %v476_v48 = vsel %vm472_vm2, %v467_v47, 0.0  ;;  %v318_v49 = vpop.f32.mrb[6].mxu1 }
 0x21e   :  { %v480_v50 = vadd.f32 %v476_v48, %v314_v44  ;;  %v464_v51 = vrot.slane %v318_v49, 7  ;;  %v320_v52 = vpop.f32.mrb[7].mxu1 }
 0x220   :  { %v469_v53 = vsel %vm465_vm1, %v464_v51, %v461_v37  ;;  %v466_v55 = vsel %vm465_vm1, %v463_v43, %v464_v51 }
 0x221   :  { %v474_v56 = vsel %vm470_vm3, %v469_v53, 0.0  ;;  %v481_v57 = vadd.f32 %v466_v55, %v320_v52 }
 0x222   :  { %v478_v58 = vadd.f32 %v474_v56, %v302_v54 }
 0x224   :  { %v499_v59 = vadd.f32 %v489_v26, %v478_v58 }
 0x231   :  { %v683_v1 = vpop.f32.mrb[8].mxu1 }
 0x232   :  { %v485_v2 = vrot.slane %v683_v1, 1  ;;  %v399_v3 = vpop.f32.mrb[9].mxu1 }
 0x233   :  { %v484_v4 = vrot.slane %v399_v3, 1 }
 0x234   :  { %v490_v5 = vsel %vm486_vm0, %v485_v2, %v482_v34 }
 0x235   :  { %v498_v6 = vsel %vm494_vm4, %v490_v5, 0.0  ;;  %v487_v7 = vsel %vm486_vm0, %v484_v4, %v485_v2  ;;  %v488_v9 = vsel %vm486_vm0, %v483_v33, %v484_v4 }
 0x236   :  { %v502_v10 = vadd.f32 %v498_v6, %v481_v57  ;;  %v496_v11 = vsel %vm492_vm5, %v488_v9, 0.0  ;;  %v501_v13 = vadd.f32 %v487_v7, %v480_v50 }
 0x237   :  { %v500_v15 = vadd.f32 %v496_v11, %v479_v41  ;;  %v533_v41 = vld [vmem:[%s1156_s5] sm:$0x1] }
 0x239   :  { %v503_v16 = vadd.f32 %v500_v15, %v499_v59 }
 0x23b   :  { %v504_v18 = vadd.f32 %v503_v16, %v501_v13 }
 0x23d   :  { %v505_v19 = vadd.f32 %v504_v18, %v502_v10 }
 0x23f   :  { %v506_v20 = vrot.slane %v505_v19, 4 }
 0x241   :  { %v507_v21 = vadd.f32 %v506_v20, %v505_v19 }
 0x243   :  { %v508_v22 = vrot.slane %v507_v21, 2 }
 0x245   :  { %v509_v23 = vadd.f32 %v508_v22, %v507_v21 }
 0x247   :  { %v510_v24 = vrot.slane %v509_v23, 1 }
 0x249   :  { %v511_v25 = vadd.f32 %v510_v24, %v509_v23 }
 0x24b   :  { %v512_v27 = vmul.f32 0.03125, %v511_v25 }
 0x24d   :  { %v513_v28 = vsub.f32 %v499_v59, %v512_v27  ;;  %v514_v29 = vsub.f32 %v500_v15, %v512_v27  ;;  %v515_v30 = vsub.f32 %v501_v13, %v512_v27  ;;  %v516_v31 = vsub.f32 %v502_v10, %v512_v27 }
 0x24f   :  { %v517_v36 = vmul.f32 %v513_v28, %v513_v28  ;;  %v518_v45 = vmul.f32 %v514_v29, %v514_v29  ;;  %v519_v54 = vmul.f32 %v515_v30, %v515_v30  ;;  %v520_v32 = vmul.f32 %v516_v31, %v516_v31 }
 0x251   :  { %v521_v63 = vadd.f32 %v518_v45, %v517_v36 }
 0x253   :  { %v522_v33 = vadd.f32 %v521_v63, %v519_v54 }
 0x255   :  { %v523_v8 = vadd.f32 %v522_v33, %v520_v32 }
 0x257   :  { %v524_v34 = vrot.slane %v523_v8, 4 }
 0x259   :  { %v525_v17 = vadd.f32 %v524_v34, %v523_v8 }
 0x25b   :  { %v526_v37 = vrot.slane %v525_v17, 2 }
 0x25d   :  { %v527_v26 = vadd.f32 %v526_v37, %v525_v17 }
 0x25f   :  { %v528_v38 = vrot.slane %v527_v26, 1 }
 0x261   :  { %v529_v35 = vadd.f32 %v528_v38, %v527_v26 }
 0x263   :  { %v530_v39 = vmul.f32 0.03125, %v529_v35 }
 0x265   :  { %v531_v40 = vadd.f32 1e-05, %v530_v39 }
 0x267   :  { %799 = vrsqrt.f32 %v531_v40 }
 0x271   :  { %v800_v42 = vpop.eup %799 }
 0x272   :  { %v534_v43 = vmul.f32 %v800_v42, %v533_v41 }
 0x274   :  { %v538_v44 = vrot.slane %v534_v43, %v165_v14 }
 0x276   :  { %v539_v47 = vmul.f32 %v538_v44, %v513_v28  ;;  %v540_v48 = vmul.f32 %v538_v44, %v514_v29  ;;  %v541_v49 = vmul.f32 %v538_v44, %v515_v30  ;;  %v542_v50 = vmul.f32 %v538_v44, %v516_v31 }
 0x278   :  { %v550_v51 = vadd.f32 %v567_v46, %v539_v47  ;;  %v551_v52 = vadd.f32 %v567_v46, %v540_v48  ;;  %v552_v53 = vadd.f32 %v567_v46, %v541_v49  ;;  %v553_v55 = vadd.f32 %v567_v46, %v542_v50 }
 0x27a   :  { %v554_v56 = vmax.f32 %v550_v51, 0.0  ;;  %v555_v57 = vmax.f32 %v551_v52, 0.0  ;;  %v556_v58 = vmax.f32 %v552_v53, 0.0  ;;  %v557_v59 = vmax.f32 %v553_v55, 0.0 }
 0x27c   :  { %558 = vst [vmem:[%s1158_s7] sm:$0xff] %v554_v56  ;;  %559 = vst [vmem:[%s1158_s7 + $0x8] sm:$0xff] %v555_v57 }
 0x27d   :  { %560 = vst [vmem:[%s1158_s7 + $0x10] sm:$0xff] %v556_v58  ;;  %561 = vst [vmem:[%s1158_s7 + $0x18] sm:$0xff] %v557_v59 }

</bundles_post_ra>
